<compile_context>
chip_gen: v7x
topology: tpu7x:2x2x1
jax: 0.10.0
libtpu: 0.0.40
codegen_flags: <defaults>
</compile_context>

<pallas_src>
import functools

import numpy as np
import jax
import jax.numpy as jnp
from jax.experimental import pallas as pl
from jax.experimental.pallas import tpu as pltpu


# ---------------------------------------------------------------------------
# Rotation-matrix bank (replicates open3d get_rotation_matrix_from_xyz =
# Rx(a) @ Ry(b) @ Rz(c)), built deterministically in numpy.
# ---------------------------------------------------------------------------
def _rot_xyz(rx, ry, rz):
    cx, sx = np.cos(rx), np.sin(rx)
    cy, sy = np.cos(ry), np.sin(ry)
    cz, sz = np.cos(rz), np.sin(rz)
    Rx = np.array([[1, 0, 0], [0, cx, -sx], [0, sx, cx]], dtype=np.float64)
    Ry = np.array([[cy, 0, sy], [0, 1, 0], [-sy, 0, cy]], dtype=np.float64)
    Rz = np.array([[cz, -sz, 0], [sz, cz, 0], [0, 0, 1]], dtype=np.float64)
    return Rx @ Ry @ Rz


def build_rotation_matrices(rot_range=(np.pi / 3, np.pi / 3, np.pi / 3)):
    rx_r = np.linspace(-rot_range[0], rot_range[0], 10)
    ry_r = np.linspace(-rot_range[1], rot_range[1], 10)
    rz_r = np.linspace(-rot_range[2], rot_range[2], 10)
    mats = []
    for rx in rx_r:
        for ry in ry_r:
            for rz in rz_r:
                mats.append(_rot_xyz(rx, ry, rz))
    for _ in range(10):  # identity matrices appended, as in the module
        mats.append(_rot_xyz(0.0, 0.0, 0.0))
    return jnp.asarray(np.stack(mats).astype(np.float32))  # (1010, 3, 3)


# ---------------------------------------------------------------------------
# Pallas kernel.  Per (batch, row-chunk) block of shape (G, 3*D):
#   out[:, j*D:(j+1)*D] =
#       R[0,j]*p_x + R[1,j]*p_y + R[2,j]*p_z + t[j]  (+ streamed noise)
# The 12 scalars per batch (R row-major, then t) live in SMEM via scalar
# prefetch as one flat (B*12,) f32 array (avoids 2-D SMEM padding).
# ---------------------------------------------------------------------------
def _se3_aug_kernel(scal_ref, pts_ref, *rest, d, use_noise):
    if use_noise:
        noise_ref, out_ref = rest
    else:
        (out_ref,) = rest

    b = pl.program_id(0)
    base = 12 * b

    # Per-plane reads straight from the ref (no full-block materialization).
    px = pts_ref[:, 0 * d:1 * d].astype(jnp.float32)
    py = pts_ref[:, 1 * d:2 * d].astype(jnp.float32)
    pz = pts_ref[:, 2 * d:3 * d].astype(jnp.float32)

    for j in range(3):
        plane = (scal_ref[base + 0 + j] * px
                 + scal_ref[base + 3 + j] * py
                 + scal_ref[base + 6 + j] * pz
                 + scal_ref[base + 9 + j])
        if use_noise:
            plane = plane + noise_ref[:, j * d:(j + 1) * d]
        out_ref[:, j * d:(j + 1) * d] = plane.astype(out_ref.dtype)


def _choose_chunk(num_rows, lane_width, max_block_bytes=2 * 1024 * 1024):
    """Sublane-aligned row-chunk whose f32 working block stays <= budget."""
    lane_pad = ((lane_width + 127) // 128) * 128
    bytes_per_row = lane_pad * 4                  # f32 working set dominates
    cap = max(1, max_block_bytes // bytes_per_row)
    if num_rows <= cap:
        return num_rows                           # single full-extent block
    g = (cap // 8) * 8                            # keep sublane alignment
    return max(8, min(g, num_rows))


def se3_augment(points, scal, noise, *, d, chunk=None):
    """points: (B, T*O, 3*D) native dtype; scal: (B*12,) f32; noise: same shape
    as points (f32) or None."""
    B, TO, ND = points.shape
    assert ND == 3 * d
    G = chunk if chunk is not None else _choose_chunk(TO, ND)
    grid = (B, pl.cdiv(TO, G))
    use_noise = noise is not None

    kernel = functools.partial(_se3_aug_kernel, d=d, use_noise=use_noise)
    blk = pl.BlockSpec((None, G, ND), lambda b, t, scal_ref: (b, t, 0))
    in_specs = [blk, blk] if use_noise else [blk]
    operands = (scal, points, noise) if use_noise else (scal, points)

    itemsize = np.dtype(points.dtype).itemsize
    bytes_accessed = int(points.size) * itemsize * 2 + int(scal.size) * 4
    if use_noise:
        bytes_accessed += int(noise.size) * 4
    flops = int(points.size) * (7 if use_noise else 6)

    return pl.pallas_call(
        kernel,
        out_shape=jax.ShapeDtypeStruct((B, TO, ND), points.dtype),
        grid_spec=pltpu.PrefetchScalarGridSpec(
            num_scalar_prefetch=1,
            grid=grid,
            in_specs=in_specs,
            out_specs=blk,
        ),
        input_output_aliases={1: 0},   # points (after scalar prefetch) -> out
        compiler_params=pltpu.CompilerParams(
            dimension_semantics=("parallel", "parallel"),
            vmem_limit_bytes=32 * 1024 * 1024),
        cost_estimate=pl.CostEstimate(flops=flops, transcendentals=0,
                                      bytes_accessed=bytes_accessed),
    )(*operands)


# ---------------------------------------------------------------------------
# Module wrapper (glue: free reshapes, RNG draws, rotation gather)
# ---------------------------------------------------------------------------
class SE3Augmentation3Pallas:
    def __init__(self, mean=0.0, std=0.02, enabled=True, use_position=True,
                 use_rotation=True, location_range=(1.0, 1.0, 1.0),
                 rot_range=(np.pi / 3, np.pi / 3, np.pi / 3)):
        self.mean = float(mean)
        self.std = float(std)
        self.enabled = enabled
        self.use_position = use_position
        self.use_rotation = use_rotation
        self.location_range = jnp.asarray(location_range, dtype=jnp.float32)
        self.rotation_matrices = build_rotation_matrices(rot_range)  # (1010,3,3)
        self.training = True

    def __call__(self, point_set, key):
        if not (self.training and self.enabled):
            return point_set

        B, T, O, N, D = point_set.shape
        assert N == 3
        # Free, contiguous reshape only — native dtype, no transpose, no upcast.
        pts = point_set.reshape(B, T * O, N * D)

        k_idx, k_trans, k_noise = jax.random.split(key, 3)
        if self.use_rotation:
            sel = jax.random.randint(k_idx, (B,), 0,
                                     self.rotation_matrices.shape[0])
            rot = self.rotation_matrices[sel].reshape(B, 9)          # (B, 9)
            trans = (jax.random.uniform(k_trans, (B, 3), dtype=jnp.float32)
                     * self.location_range)                          # (B, 3)
        else:
            rot = jnp.tile(jnp.eye(3, dtype=jnp.float32).reshape(1, 9), (B, 1))
            trans = jnp.zeros((B, 3), dtype=jnp.float32)
        scal = jnp.concatenate([rot, trans], axis=1).reshape(-1)     # (B*12,)

        noise = None
        if self.use_position:
            # Noise in f32 regardless of input dtype (added pre-cast in kernel).
            noise = (self.mean
                     + self.std * jax.random.normal(k_noise, pts.shape,
                                                    dtype=jnp.float32))

        out = se3_augment(pts, scal, noise, d=D)
        return out.reshape(B, T, O, N, D)


if __name__ == "__main__":
    # Small shapes consistent with the module: N must be 3 (coordinate dim).
    B, T, O, N, D = 2, 2, 2, 3, 128
    key = jax.random.PRNGKey(0)
    k_data, k_aug = jax.random.split(key)
    point_set = jax.random.normal(k_data, (B, T, O, N, D), dtype=jnp.float32)

    # --- 1) rotation + translation only (noise disabled): exact check ---
    aug_rt = SE3Augmentation3Pallas(use_position=False)
    out_rt = jax.block_until_ready(aug_rt(point_set, k_aug))
    assert out_rt.shape == (B, T, O, N, D)

    # Pure-JAX reference reproducing the same RNG draws (same key-split order).
    k_idx, k_trans, k_noise = jax.random.split(k_aug, 3)
    sel = jax.random.randint(k_idx, (B,), 0, aug_rt.rotation_matrices.shape[0])
    rot = aug_rt.rotation_matrices[sel]                               # (B, 3, 3)
    trans = (jax.random.uniform(k_trans, (B, 3), dtype=jnp.float32)
             * aug_rt.location_range)
    ref_rt = (jnp.einsum("btond,bnj->btojd", point_set, rot)
              + trans[:, None, None, :, None])
    np.testing.assert_allclose(np.asarray(out_rt), np.asarray(ref_rt),
                               rtol=1e-5, atol=1e-5)

    # --- 2) full path with streamed gaussian noise: exact check ---
    aug = SE3Augmentation3Pallas(use_position=True)
    out = jax.block_until_ready(aug(point_set, k_aug))
    assert out.shape == (B, T, O, N, D)
    noise = (aug.mean + aug.std
             * jax.random.normal(k_noise, (B, T * O, N * D), dtype=jnp.float32))
    ref = ref_rt + noise.reshape(B, T, O, N, D)
    np.testing.assert_allclose(np.asarray(out), np.asarray(ref),
                               rtol=1e-5, atol=1e-5)

    print("KERNEL_OK")
</pallas_src>

<mosaic_0001>
module attributes {stable_mosaic.version = 11 : i64} {
  func.func @_se3_aug_kernel(%arg0: i32, %arg1: i32, %arg2: memref<24xf32, #tpu.memory_space<smem>>, %arg3: memref<1x4x384xf32, #tpu.memory_space<vmem>>, %arg4: memref<1x4x384xf32, #tpu.memory_space<vmem>>) attributes {dimension_semantics = [#tpu.dimension_semantics<parallel>, #tpu.dimension_semantics<parallel>], iteration_bounds = array<i64: 2, 1>, scalar_prefetch = 1 : i64, scratch_operands = 0 : i64, tpu.core_type = #tpu.core_type<tc>, window_params = [{transform_indices = @transform_0, window_bounds = array<i64: 1, 4, 384>}, {transform_indices = @transform_1, window_bounds = array<i64: 1, 4, 384>}]} {
    %c12_i32 = arith.constant 12 : i32
    %0 = arith.muli %c12_i32, %arg0 : i32
    %c0 = arith.constant 0 : index
    %c0_0 = arith.constant 0 : index
    %c0_1 = arith.constant 0 : index
    %1 = vector.load %arg3[%c0, %c0_0, %c0_1] : memref<1x4x384xf32, #tpu.memory_space<vmem>>, vector<1x4x128xf32>
    %2 = vector.shape_cast %1 : vector<1x4x128xf32> to vector<4x128xf32>
    %c0_2 = arith.constant 0 : index
    %c0_3 = arith.constant 0 : index
    %c128 = arith.constant 128 : index
    %3 = vector.load %arg3[%c0_2, %c0_3, %c128] : memref<1x4x384xf32, #tpu.memory_space<vmem>>, vector<1x4x128xf32>
    %4 = vector.shape_cast %3 : vector<1x4x128xf32> to vector<4x128xf32>
    %c0_4 = arith.constant 0 : index
    %c0_5 = arith.constant 0 : index
    %c256 = arith.constant 256 : index
    %5 = vector.load %arg3[%c0_4, %c0_5, %c256] : memref<1x4x384xf32, #tpu.memory_space<vmem>>, vector<1x4x128xf32>
    %6 = vector.shape_cast %5 : vector<1x4x128xf32> to vector<4x128xf32>
    %c0_i32 = arith.constant 0 : i32
    %7 = arith.addi %0, %c0_i32 : i32
    %c0_i32_6 = arith.constant 0 : i32
    %8 = arith.addi %7, %c0_i32_6 : i32
    %9 = arith.index_cast %8 : i32 to index
    %10 = memref.load %arg2[%9] : memref<24xf32, #tpu.memory_space<smem>>
    %11 = vector.broadcast %10 : f32 to vector<4x128xf32>
    %12 = arith.mulf %11, %2 : vector<4x128xf32>
    %c3_i32 = arith.constant 3 : i32
    %13 = arith.addi %0, %c3_i32 : i32
    %c0_i32_7 = arith.constant 0 : i32
    %14 = arith.addi %13, %c0_i32_7 : i32
    %15 = arith.index_cast %14 : i32 to index
    %16 = memref.load %arg2[%15] : memref<24xf32, #tpu.memory_space<smem>>
    %17 = vector.broadcast %16 : f32 to vector<4x128xf32>
    %18 = arith.mulf %17, %4 : vector<4x128xf32>
    %19 = arith.addf %12, %18 : vector<4x128xf32>
    %c6_i32 = arith.constant 6 : i32
    %20 = arith.addi %0, %c6_i32 : i32
    %c0_i32_8 = arith.constant 0 : i32
    %21 = arith.addi %20, %c0_i32_8 : i32
    %22 = arith.index_cast %21 : i32 to index
    %23 = memref.load %arg2[%22] : memref<24xf32, #tpu.memory_space<smem>>
    %24 = vector.broadcast %23 : f32 to vector<4x128xf32>
    %25 = arith.mulf %24, %6 : vector<4x128xf32>
    %26 = arith.addf %19, %25 : vector<4x128xf32>
    %c9_i32 = arith.constant 9 : i32
    %27 = arith.addi %0, %c9_i32 : i32
    %c0_i32_9 = arith.constant 0 : i32
    %28 = arith.addi %27, %c0_i32_9 : i32
    %29 = arith.index_cast %28 : i32 to index
    %30 = memref.load %arg2[%29] : memref<24xf32, #tpu.memory_space<smem>>
    %31 = vector.broadcast %30 : f32 to vector<4x128xf32>
    %32 = arith.addf %26, %31 : vector<4x128xf32>
    %c0_10 = arith.constant 0 : index
    %c0_11 = arith.constant 0 : index
    %c0_12 = arith.constant 0 : index
    %33 = vector.load %arg4[%c0_10, %c0_11, %c0_12] : memref<1x4x384xf32, #tpu.memory_space<vmem>>, vector<1x4x128xf32>
    %34 = vector.shape_cast %33 : vector<1x4x128xf32> to vector<4x128xf32>
    %35 = vector.shape_cast %32 : vector<4x128xf32> to vector<1x4x128xf32>
    tpu.vector_store %arg4[%c0_10, %c0_11, %c0_12], %35 {strides = array<i32>} : memref<1x4x384xf32, #tpu.memory_space<vmem>>, vector<1x4x128xf32>,
    %c0_i32_13 = arith.constant 0 : i32
    %36 = arith.addi %0, %c0_i32_13 : i32
    %c1_i32 = arith.constant 1 : i32
    %37 = arith.addi %36, %c1_i32 : i32
    %38 = arith.index_cast %37 : i32 to index
    %39 = memref.load %arg2[%38] : memref<24xf32, #tpu.memory_space<smem>>
    %40 = vector.broadcast %39 : f32 to vector<4x128xf32>
    %41 = arith.mulf %40, %2 : vector<4x128xf32>
    %c3_i32_14 = arith.constant 3 : i32
    %42 = arith.addi %0, %c3_i32_14 : i32
    %c1_i32_15 = arith.constant 1 : i32
    %43 = arith.addi %42, %c1_i32_15 : i32
    %44 = arith.index_cast %43 : i32 to index
    %45 = memref.load %arg2[%44] : memref<24xf32, #tpu.memory_space<smem>>
    %46 = vector.broadcast %45 : f32 to vector<4x128xf32>
    %47 = arith.mulf %46, %4 : vector<4x128xf32>
    %48 = arith.addf %41, %47 : vector<4x128xf32>
    %c6_i32_16 = arith.constant 6 : i32
    %49 = arith.addi %0, %c6_i32_16 : i32
    %c1_i32_17 = arith.constant 1 : i32
    %50 = arith.addi %49, %c1_i32_17 : i32
    %51 = arith.index_cast %50 : i32 to index
    %52 = memref.load %arg2[%51] : memref<24xf32, #tpu.memory_space<smem>>
    %53 = vector.broadcast %52 : f32 to vector<4x128xf32>
    %54 = arith.mulf %53, %6 : vector<4x128xf32>
    %55 = arith.addf %48, %54 : vector<4x128xf32>
    %c9_i32_18 = arith.constant 9 : i32
    %56 = arith.addi %0, %c9_i32_18 : i32
    %c1_i32_19 = arith.constant 1 : i32
    %57 = arith.addi %56, %c1_i32_19 : i32
    %58 = arith.index_cast %57 : i32 to index
    %59 = memref.load %arg2[%58] : memref<24xf32, #tpu.memory_space<smem>>
    %60 = vector.broadcast %59 : f32 to vector<4x128xf32>
    %61 = arith.addf %55, %60 : vector<4x128xf32>
    %c0_20 = arith.constant 0 : index
    %c0_21 = arith.constant 0 : index
    %c128_22 = arith.constant 128 : index
    %62 = vector.load %arg4[%c0_20, %c0_21, %c128_22] : memref<1x4x384xf32, #tpu.memory_space<vmem>>, vector<1x4x128xf32>
    %63 = vector.shape_cast %62 : vector<1x4x128xf32> to vector<4x128xf32>
    %64 = vector.shape_cast %61 : vector<4x128xf32> to vector<1x4x128xf32>
    tpu.vector_store %arg4[%c0_20, %c0_21, %c128_22], %64 {strides = array<i32>} : memref<1x4x384xf32, #tpu.memory_space<vmem>>, vector<1x4x128xf32>,
    %c0_i32_23 = arith.constant 0 : i32
    %65 = arith.addi %0, %c0_i32_23 : i32
    %c2_i32 = arith.constant 2 : i32
    %66 = arith.addi %65, %c2_i32 : i32
    %67 = arith.index_cast %66 : i32 to index
    %68 = memref.load %arg2[%67] : memref<24xf32, #tpu.memory_space<smem>>
    %69 = vector.broadcast %68 : f32 to vector<4x128xf32>
    %70 = arith.mulf %69, %2 : vector<4x128xf32>
    %c3_i32_24 = arith.constant 3 : i32
    %71 = arith.addi %0, %c3_i32_24 : i32
    %c2_i32_25 = arith.constant 2 : i32
    %72 = arith.addi %71, %c2_i32_25 : i32
    %73 = arith.index_cast %72 : i32 to index
    %74 = memref.load %arg2[%73] : memref<24xf32, #tpu.memory_space<smem>>
    %75 = vector.broadcast %74 : f32 to vector<4x128xf32>
    %76 = arith.mulf %75, %4 : vector<4x128xf32>
    %77 = arith.addf %70, %76 : vector<4x128xf32>
    %c6_i32_26 = arith.constant 6 : i32
    %78 = arith.addi %0, %c6_i32_26 : i32
    %c2_i32_27 = arith.constant 2 : i32
    %79 = arith.addi %78, %c2_i32_27 : i32
    %80 = arith.index_cast %79 : i32 to index
    %81 = memref.load %arg2[%80] : memref<24xf32, #tpu.memory_space<smem>>
    %82 = vector.broadcast %81 : f32 to vector<4x128xf32>
    %83 = arith.mulf %82, %6 : vector<4x128xf32>
    %84 = arith.addf %77, %83 : vector<4x128xf32>
    %c9_i32_28 = arith.constant 9 : i32
    %85 = arith.addi %0, %c9_i32_28 : i32
    %c2_i32_29 = arith.constant 2 : i32
    %86 = arith.addi %85, %c2_i32_29 : i32
    %87 = arith.index_cast %86 : i32 to index
    %88 = memref.load %arg2[%87] : memref<24xf32, #tpu.memory_space<smem>>
    %89 = vector.broadcast %88 : f32 to vector<4x128xf32>
    %90 = arith.addf %84, %89 : vector<4x128xf32>
    %c0_30 = arith.constant 0 : index
    %c0_31 = arith.constant 0 : index
    %c256_32 = arith.constant 256 : index
    %91 = vector.load %arg4[%c0_30, %c0_31, %c256_32] : memref<1x4x384xf32, #tpu.memory_space<vmem>>, vector<1x4x128xf32>
    %92 = vector.shape_cast %91 : vector<1x4x128xf32> to vector<4x128xf32>
    %93 = vector.shape_cast %90 : vector<4x128xf32> to vector<1x4x128xf32>
    tpu.vector_store %arg4[%c0_30, %c0_31, %c256_32], %93 {strides = array<i32>} : memref<1x4x384xf32, #tpu.memory_space<vmem>>, vector<1x4x128xf32>,
    return
  }
  func.func @transform_0(%arg0: i32, %arg1: i32, %arg2: memref<24xf32, #tpu.memory_space<smem>>) -> (i32, i32, i32) {
    %c0_i32 = arith.constant 0 : i32
    %c0_i32_0 = arith.constant 0 : i32
    return %arg0, %arg1, %c0_i32 : i32, i32, i32
  }
  func.func @transform_1(%arg0: i32, %arg1: i32, %arg2: memref<24xf32, #tpu.memory_space<smem>>) -> (i32, i32, i32) {
    %c0_i32 = arith.constant 0 : i32
    %c0_i32_0 = arith.constant 0 : i32
    return %arg0, %arg1, %c0_i32 : i32, i32, i32
  }
}

</mosaic_0001>

<bundles_post_ra>
// kernel: tpu_custom_call.1
= control target key start
LH: loop header
LB: loop body
LE: loop exit
PB: predicated region body
PF: predicated region fallthrough
CT: control target
= control target key end

     0   :  { %s739_s0 = inlined_call_operand.vmem [shape: f32[24], index: 0, kind: input, shape index: {}]   ;;  %s740_s1 = inlined_call_operand.hbm [shape: f32[2,4,384], index: 1, kind: input, shape index: {}, may-alias: {1,2}]   ;;  %s741_s2 = inlined_call_operand.hbm [shape: f32[2,4,384], index: 2, kind: output, shape index: {}, may-alias: {1,2}]  }
   0x1   :  { %s7_s11 = sshll.u32 %s739_s0, 4  ;;  %s8_s11 = int_to_ptr.vmem [resolvable:$true] %s7_s11 }
   0x2   :  { %s395_s12 = scalar_lea.vmem %s8_s11, 16  ;;  %p400_p1 = scmp.lt.s32.totalorder %s8_s11, %s8_s11 }
   0x3   :  { %p396_p0 = scmp.ne.s32.totalorder %s8_s11, %s395_s12  ;;  %p401_p2 = scmp.lt.s32.totalorder %s395_s12, %s395_s12 }
   0x5   :  { %p402_p3 = por %p401_p2, %p400_p1 }
   0x7   :  { %p403_p4 = pnand %p402_p3, %p396_p0 }
   0x9   :  { %406 = shalt.err (!%p403_p4)  }
   0xa   :  { %s523_s13 = smov [#allocation3]  }
   0xb   :  { %10 = dma.vmem_to_smem %s8_s11, 16, %s523_s13, [#allocation2] }
   0xc   :  { %489 = dma.done.wait [#allocation2], 16 }
   0xd   :  { %490 = vsyncadd [#allocation2], 4294967280 }
   0xe   :  { %12 = sfence }
   0xf   :  { %13 = vsyncpa [#allocation5], 0 }
  0x10   :  { %15 = vsyncpa [#allocation5 + $0x1], 0 }
  0x11   :  { %16 = vsyncpa [#allocation6], 0 }
  0x12   :  { %18 = vsyncpa [#allocation6 + $0x1], 0  ;;  %s544_s14 = smov 0   ;;  %s546_s0 = smov 0  }
  0x13   :  { %s548_s15 = smov 0   ;;  %s550_s16 = smov 0  }
  0x14   :  { %s552_s17 = smov 0   ;;  %s554_s18 = smov 0  }
  0x15 LB: > { %s319_s19 = sadd.s32 4294967295, %s521_s18   ;;  %s320_s20 = sadd.s32 4294967294, %s521_s18   ;;  %s521_s18 = sphi %s554_s18, %s24_s18   ;;  %s517_s17 = sphi %s552_s17, %s756_s17   ;;  %s513_s16 = sphi %s550_s16, %s755_s16   ;;  %s509_s15 = sphi %s548_s15, %s754_s15   ;;  %s505_s0 = sphi %s546_s0, %s753_s0   ;;  %s501_s14 = sphi %s544_s14, %s752_s14  }
  0x16   : > { %s36_s21 = sadd.s32 1, %s517_s17  ;;  %s45_s22 = sadd.s32 1, %s509_s15 }
  0x17   : > { %p38_p5 = scmp.ge.s32.totalorder %s36_s21, 2  ;;  %p52_p6 = scmp.ne.s32.totalorder %s509_s15, %s505_s0 }
  0x18   : > { %p53_p7 = scmp.eq.s32.totalorder %s521_s18, 0  ;;  %p58_p8 = scmp.ne.s32.totalorder %s505_s0, %s501_s14 }
  0x19   : > { %s758_s21 = smov (%p38_p5, %s36_s21), 0  ;;  %p59_p10 = scmp.eq.s32.totalorder %s319_s19, 0 }
  0x1a   : > { %p585_p9 = por %p53_p7, %p52_p6  ;;  %s40_s24 = ssub.s32 %s517_s17, %s758_s21 }
  0x1b   : > { %p84_p11 = scmp.eq.s32.totalorder %s319_s19, 1  ;;  %p43_p12 = scmp.eq.s32.totalorder %s40_s24, 0 }
  0x1c   : > { %p591_p13 = por %p59_p10, %p58_p8  ;;  %p90_p1 = scmp.eq.s32.totalorder %s320_s20, 1 }
  0x1d   : > { %p595_p0 = por %p84_p11, %p52_p6  ;;  %p344_p4 = scmp.lt.s32.totalorder %s521_s18, 2 }
  0x1e   : > { %s600_s27 = scalar_select %p43_p12, %s509_s15, %s45_s22  }
  0x1f   : > { %s745_s26 = scalar_select %p595_p0, 1, 0 }
  0x20   : > { %p602_p2 = por %p90_p1, %p58_p8  ;;  %s110_s29 = sand.u32 1, %s509_s15  }
  0x21   : > { %s328_s30 = smul.u32 12, %s110_s29  ;;  %p612_p5 = pnand %p344_p4, %p585_p9 }
  0x22   : > { %s746_s28 = scalar_select %p602_p2, 1, 0 }
  0x23   : > { %s329_s3 = smul.u32 192, %s517_s17  ;;  %s114_s8 = scalar_lea.vmem [#allocation4], %s328_s30 }
  0x24   : > { %s124_s9 = sshll.u32 %s114_s8, 4  ;;  %s111_s10 = scalar_lea.sflag [#allocation5], %s110_s29  ;;  %s622_s9 = int_to_ptr.vmem [resolvable:$true] %s124_s9 }
  0x25   : > { %s620_s7 = scalar_lea.hbm %s740_s1, %s329_s3  ;;  %p409_p8 = pneg %p612_p5 }
  0x26   : > { %s407_s11 = scalar_lea.hbm %s620_s7, 192  ;;  %s412_s19 = scalar_lea.hbm %s740_s1, 384 }
  0x27   : > { %p408_p7 = scmp.ne.s32.totalorder %s620_s7, %s407_s11  ;;  %p413_p11 = scmp.lt.u32.totalorder %s620_s7, %s740_s1 }
  0x28   : > { %p414_p12 = scmp.lt.u32.totalorder %s412_s19, %s407_s11  ;;  %p416_p4 = scmp.lt.u32.totalorder %s407_s11, %s620_s7 }
  0x29   : > { %p410_p9 = pnand %p409_p8, %p408_p7 }
  0x2a   : > { %p415_p1 = por %p414_p12, %p413_p11 }
  0x2b   : > { %p411_p10 = pneg %p410_p9 }
  0x2c   : > { %p417_p3 = por %p416_p4, %p415_p1 }
  0x2e   : > { %p418_p6 = pnand %p417_p3, %p411_p10 }
  0x30   : > { %421 = shalt.err (!%p418_p6)
}
  0x31   : > { %s422_s23 = scalar_lea.vmem %s622_s9, 192  ;;  %s524_s24 = smov [#allocation4]  }
  0x32   : > { %p423_p7 = scmp.ne.s32.totalorder %s622_s9, %s422_s23  ;;  %s427_s29 = sshll.u32 %s524_s24, 4  ;;  %s428_s29 = int_to_ptr.vmem [resolvable:$false] %s427_s29 }
  0x33   : > { %s429_s30 = scalar_lea.vmem %s428_s29, 384  ;;  %p430_p0 = scmp.lt.s32.totalorder %s622_s9, %s428_s29 }
  0x34   : > { %p425_p9 = pnand %p423_p7, %p409_p8  ;;  %p431_p11 = scmp.lt.s32.totalorder %s429_s30, %s422_s23 }
  0x36   : > { %p426_p2 = pneg %p425_p9  ;;  %p432_p12 = por %p431_p11, %p430_p0 }
  0x38   : > { %p433_p1 = pnand %p432_p12, %p426_p2 }
  0x3a   : > { %436 = shalt.err (!%p433_p1)
}
  0x3b   : > { %339 = dma.hbm_to_vmem [thread:$0]  (!%p612_p5), %s620_s7, 192, %s622_s9, %s111_s10  }
  0x3c   : > { %p129_p3 = scmp.lt.s32.totalorder %s521_s18, 3  ;;  %p748_p6 = scmp.ge.s32.totalorder %s521_s18, 1 }
  0x3e   : > { %p130_p8 = pnand %p748_p6, %p129_p3 }
  0x3f   : > { %s653_s3 = sand.u32 (!%p130_p8), 1, %s505_s0  }
  0x40   : > { %133 = sbr.rel (%p130_p8) target bundleno = 112 (0x70), region = 24  ;;  %s136_s6 = scalar_lea.sflag (!%p130_p8), [#allocation5], %s653_s3 }
  0x41   : > { %s330_s5 = smul.u32 (!%p130_p8), 12, %s653_s3 }
  0x43   : > { %s139_s4 = scalar_lea.vmem (!%p130_p8), [#allocation4], %s330_s5 }
  0x47   : > { %492 = dma.done.wait (%p591_p13), %s136_s6, 192  }
  0x48   : > { %494 = vsyncadd (%p591_p13), %s136_s6, 4294967104  ;;  %s664_s7 = smul.u32 12, %s513_s16  ;;  %v159_v0 = vld [vmem:[%s139_s4] sm:$0xf]  ;;  %v160_v1 = vld [vmem:[%s139_s4 + $0x4] sm:$0xf] }
  0x49   : > { %v161_v2 = vld [vmem:[%s139_s4 + $0x8] sm:$0xf]  ;;  %p749_p0 = scmp.ne.s32.totalorder %s745_s26, 0 }
  0x4a   : > { %s162_s8 = sld [smem:[#allocation3 + %s664_s7]]  ;;  %s165_s9 = sadd.s32 3, %s664_s7 }
  0x4b   : > { %s166_s10 = sld [smem:[#allocation3 + %s165_s9]]  ;;  %s170_s11 = sadd.s32 6, %s664_s7 }
  0x4c   : > { %s171_s12 = sld [smem:[#allocation3 + %s170_s11]]  ;;  %s175_s13 = sadd.s32 9, %s664_s7 }
  0x4d   : > { %s670_s19 = sld [smem:[#allocation3 + %s175_s13]]  ;;  %s180_s25 = sadd.s32 1, %s664_s7 }
  0x4e   : > { %s184_s20 = sadd.s32 4, %s664_s7  ;;  %s181_s22 = sld [smem:[#allocation3 + %s180_s25]] }
  0x4f   : > { %s185_s23 = sld [smem:[#allocation3 + %s184_s20]]  ;;  %s189_s24 = sadd.s32 7, %s664_s7 }
  0x50   : > { %v163_v3 = vstv %s162_s8  ;;  %s194_s29 = sadd.s32 10, %s664_s7  ;;  %s190_s30 = sld [smem:[#allocation3 + %s189_s24]] }
  0x51   : > { %v164_v4 = vmul.f32 %v163_v3, %v159_v0  ;;  %v167_v5 = vstv %s166_s10  ;;  %s676_s6 = sld [smem:[#allocation3 + %s194_s29]]  ;;  %s199_s9 = sadd.s32 2, %s664_s7 }
  0x52   : > { %v168_v6 = vmul.f32 %v167_v5, %v160_v1  ;;  %v172_v7 = vstv %s171_s12  ;;  %s203_s11 = sadd.s32 5, %s664_s7  ;;  %s200_s4 = sld [smem:[#allocation3 + %s199_s9]] }
  0x53   : > { %v173_v8 = vmul.f32 %v172_v7, %v161_v2  ;;  %s204_s8 = sld [smem:[#allocation3 + %s203_s11]]  ;;  %v177_v10 = vstv %s670_s19  ;;  %s208_s13 = sadd.s32 8, %s664_s7 }
  0x54   : > { %v169_v9 = vadd.f32 %v168_v6, %v164_v4  ;;  %s213_s25 = sadd.s32 11, %s664_s7  ;;  %v182_v12 = vstv %s181_s22  ;;  %s209_s10 = sld [smem:[#allocation3 + %s208_s13]] }
  0x55   : > { %v186_v13 = vstv %s185_s23  ;;  %s214_s20 = sld [smem:[#allocation3 + %s213_s25]]  ;;  %v183_v14 = vmul.f32 %v182_v12, %v159_v0  ;;  %s157_s12 = scalar_lea.vmem [#allocation7], %s330_s5 }
  0x56   : > { %v174_v11 = vadd.f32 %v173_v8, %v169_v9  ;;  %v187_v15 = vmul.f32 %v186_v13, %v160_v1  ;;  %v191_v17 = vstv %s190_s30  ;;  %s331_s7 = smul.u32 192, %s513_s16  ;;  %s235_s19 = sshll.u32 %s157_s12, 4  ;;  %s687_s19 = int_to_ptr.vmem [resolvable:$true] %s235_s19 }
  0x57   : > { %v192_v19 = vmul.f32 %v191_v17, %v161_v2  ;;  %v196_v20 = vstv %s676_s6  ;;  %s219_s24 = scalar_lea.sflag [#allocation6], %s653_s3  ;;  %s437_s29 = scalar_lea.vmem %s687_s19, 192 }
  0x58   : > { %v178_v16 = vadd.f32 %v177_v10, %v174_v11  ;;  %v188_v18 = vadd.f32 %v187_v15, %v183_v14  ;;  %v201_v21 = vstv %s200_s4  ;;  %s692_s23 = scalar_lea.hbm %s741_s2, %s331_s7  ;;  %p438_p13 = scmp.ne.s32.totalorder %s687_s19, %s437_s29 }
  0x59   : > { %v205_v22 = vstv %s204_s8  ;;  %v202_v24 = vmul.f32 %v201_v21, %v159_v0  ;;  %s525_s16 = smov [#allocation7]  }
  0x5a   : > { %179 = vst [vmem:[%s157_s12] sm:$0xf] %v178_v16  ;;  %v193_v23 = vadd.f32 %v192_v19, %v188_v18  ;;  %v206_v25 = vmul.f32 %v205_v22, %v160_v1  ;;  %v210_v26 = vstv %s209_s10  ;;  %p439_p2 = pnand %p438_p13, %p749_p0  ;;  %s441_s30 = sshll.u32 %s525_s16, 4  ;;  %s442_s30 = int_to_ptr.vmem [resolvable:$false] %s441_s30 }
  0x5b   : > { %v211_v29 = vmul.f32 %v210_v26, %v161_v2  ;;  %v215_v30 = vstv %s214_s20  ;;  %s443_s6 = scalar_lea.vmem %s442_s30, 384  ;;  %p444_p10 = scmp.lt.s32.totalorder %s687_s19, %s442_s30 }
  0x5c   : > { %v197_v27 = vadd.f32 %v196_v20, %v193_v23  ;;  %v207_v28 = vadd.f32 %v206_v25, %v202_v24  ;;  %p440_p5 = pneg %p439_p2  ;;  %p445_p4 = scmp.lt.s32.totalorder %s443_s6, %s437_s29 }
  0x5e   : > { %198 = vst [vmem:[%s157_s12 + $0x4] sm:$0xf] %v197_v27  ;;  %v212_v31 = vadd.f32 %v211_v29, %v207_v28  ;;  %p446_p7 = por %p445_p4, %p444_p10 }
  0x60   : > { %v216_v32 = vadd.f32 %v215_v30, %v212_v31  ;;  %p447_p9 = pnand %p446_p7, %p440_p5 }
  0x62   : > { %217 = vst [vmem:[%s157_s12 + $0x8] sm:$0xf] %v216_v32 }
  0x63   : > { %450 = shalt.err (!%p447_p9)
}
  0x64   : > { %s451_s3 = scalar_lea.hbm %s692_s23, 192  ;;  %s455_s4 = scalar_lea.hbm %s741_s2, 384 }
  0x65   : > { %p452_p11 = scmp.ne.s32.totalorder %s692_s23, %s451_s3  ;;  %p456_p3 = scmp.lt.u32.totalorder %s692_s23, %s741_s2 }
  0x66   : > { %p457_p6 = scmp.lt.u32.totalorder %s455_s4, %s451_s3  ;;  %p459_p13 = scmp.lt.u32.totalorder %s451_s3, %s692_s23 }
  0x67   : > { %p453_p12 = pnand %p452_p11, %p749_p0 }
  0x68   : > { %p458_p8 = por %p457_p6, %p456_p3 }
  0x69   : > { %p454_p1 = pneg %p453_p12 }
  0x6a   : > { %p460_p2 = por %p459_p13, %p458_p8 }
  0x6c   : > { %p461_p5 = pnand %p460_p2, %p454_p1 }
  0x6e   : > { %464 = shalt.err (!%p461_p5)
}
  0x6f   : > { %334 = dma.vmem_to_hbm [thread:$0]  (%p749_p0), %s687_s19, 192, %s692_s23, %s219_s24  }
  0x70 PF: > { %s247_s25 = sand.u32 1, %s501_s14   ;;  %p750_p10 = scmp.ne.s32.totalorder %s746_s28, 0 }
  0x71   : > { %p751_p4 = scmp.ge.s32.totalorder %s521_s18, 2  ;;  %s248_s10 = scalar_lea.sflag [#allocation6], %s247_s25 }
  0x73   : > { %p341_p7 = pnand %p751_p4, %p750_p10 }
  0x75   : > { %496 = dma.done.wait (!%p341_p7), %s248_s10, 192  }
  0x76   : > { %498 = vsyncadd (!%p341_p7), %s248_s10, 4294967104  ;;  %s24_s18 = sadd.s32 1, %s521_s18   ;;  %s752_s14 = smov %s505_s0 }
  0x77   : > { %p21_p9 = scmp.ge.s32.totalorder %s24_s18, 4   ;;  %s753_s0 = smov %s509_s15 }
  0x78   : > { %s754_s15 = smov %s600_s27  ;;  %s755_s16 = smov %s517_s17 }
  0x79   : > { %s756_s17 = smov %s758_s21  ;;  %23 = sbr.rel (!%p21_p9) target bundleno = 21 (0x15), region = 69 }
  0x80   :  { %253 = vsyncpa [#allocation5], 1 }
  0x81   :  { %255 = vsyncpa [#allocation5 + $0x1], 1 }
  0x82   :  { %256 = vsyncpa [#allocation6], 1 }
  0x83   :  { %258 = vsyncpa [#allocation6 + $0x1], 1 }

</bundles_post_ra>
